<compile_context>
chip_gen: v6e
topology: v6e:2x2x1
jax: 0.10.0
libtpu: 0.0.40
codegen_flags: <defaults>
</compile_context>

<pallas_src>
import jax
import jax.numpy as jnp
from jax.experimental import pallas as pl
from jax.experimental.pallas import tpu as pltpu

# Module hyper-parameters (the PyTorch file references module-level globals).
NUM_OBS = 16
CRITIC_HIDDEN_DIM = (64, 64)

_TB_MAX = 2048  # max batch columns per grid step (multiple of 128)


def _round_up(x, m):
    return ((x + m - 1) // m) * m


def _pick_tile(padded):
    """Largest 128-multiple tile that divides `padded`, is <= _TB_MAX, and leaves
    at least 2 grid steps whenever padded >= 256 (so both v7x TCs get work)."""
    k = padded // 128
    limit = _TB_MAX // 128
    if padded >= 256:
        limit = min(limit, k // 2)
    limit = max(limit, 1)
    best = 1
    for d in range(1, limit + 1):
        if k % d == 0:
            best = d
    return 128 * best


def _critic_kernel(x_ref, *refs):
    """Per-batch-tile kernel (transposed layout: activations are [features, batch]).

    refs = (w1, b1, [w_fused, b_fused], w_val, b_val, out)
    with weights stored [out, in] and biases [out, 1]."""
    out_ref = refs[-1]
    params = refs[:-1]

    # hidden1 + ReLU: (H0, NUM_OBS) @ (NUM_OBS, tb) -> (H0, tb), f32 MXU accumulation.
    w1, b1 = params[0], params[1]
    h = jnp.dot(w1[...], x_ref[...], preferred_element_type=jnp.float32) + b1[...]
    h = jnp.maximum(h, 0.0)

    # Fused Sequential: the PyTorch Sequential has NO activations between its
    # Linears, so the wrapper collapsed the chain into at most one affine layer.
    n_mid = (len(params) - 4) // 2
    idx = 2
    for _ in range(n_mid):
        w, b = params[idx], params[idx + 1]
        h = jnp.dot(w[...], h, preferred_element_type=jnp.float32) + b[...]
        idx += 2

    # Final ReLU then value head: (1, H_last) @ (H_last, tb) -> lane-dense (1, tb).
    h = jnp.maximum(h, 0.0)
    wv, bv = params[-2], params[-1]
    out_ref[...] = (
        jnp.dot(wv[...], h, preferred_element_type=jnp.float32) + bv[...]
    ).astype(out_ref.dtype)


def prepare_critic_params(params):
    """One-time (outside the per-call jit) parameter prep:
      * collapse the activation-free Sequential into a single affine map,
      * transpose weights to [out, in] and biases to [out, 1] for the
        transposed-activation kernel layout.

    `params` is the flat tuple (w1, b1, w_seq0, b_seq0, ..., w_val, b_val) with
    weights stored [in, out] and biases [1, out]."""
    w1, b1 = params[0], params[1]
    wv, bv = params[-2], params[-1]
    mids = params[2:-2]

    out = [jnp.asarray(w1).T, jnp.asarray(b1).reshape(-1, 1)]
    if mids:
        wf, bf = mids[0], mids[1]
        for i in range(2, len(mids), 2):
            w, b = mids[i], mids[i + 1]
            bf = bf @ w + b   # fuse biases through the next layer
            wf = wf @ w       # fuse weights
        out += [jnp.asarray(wf).T, jnp.asarray(bf).reshape(-1, 1)]
    out += [jnp.asarray(wv).T.reshape(1, -1), jnp.asarray(bv).reshape(1, 1)]
    return tuple(out)


@jax.jit
def critic_forward(x, kparams):
    """x: [batch, NUM_OBS] f32.  kparams: output of prepare_critic_params.
    Returns values of shape [batch, 1]."""
    batch, num_obs = x.shape

    # Pad only to a lane-dense multiple of 128, then pick a tile that divides it.
    padded = _round_up(batch, 128)
    tb = _pick_tile(padded)
    xt = x.T                                   # [NUM_OBS, batch]: batch on lanes
    if padded != batch:
        xt = jnp.pad(xt, ((0, 0), (0, padded - batch)))
    grid = (padded // tb,)

    x_spec = pl.BlockSpec((num_obs, tb), lambda i: (0, i))
    # Constant index_maps -> each weight/bias is DMA'd once and stays
    # VMEM-resident across all grid steps.
    const_specs = [pl.BlockSpec(p.shape, lambda i: (0, 0)) for p in kparams]
    # Lane-dense output: (1, tb) blocks of a (1, padded) row.
    out_spec = pl.BlockSpec((1, tb), lambda i: (0, i))

    # Advisory cost estimate for XLA scheduling around the custom call.
    dims = (NUM_OBS,) + tuple(CRITIC_HIDDEN_DIM) + (1,)
    flops_per_col = sum(2 * dims[i] * dims[i + 1] for i in range(len(dims) - 1))
    param_bytes = sum(int(p.size) * p.dtype.itemsize for p in kparams)
    cost = pl.CostEstimate(
        flops=flops_per_col * padded,
        transcendentals=0,
        bytes_accessed=padded * (num_obs + 1) * 4 + param_bytes,
    )

    out_row = pl.pallas_call(
        _critic_kernel,
        out_shape=jax.ShapeDtypeStruct((1, padded), jnp.float32),
        grid_spec=pltpu.PrefetchScalarGridSpec(
            num_scalar_prefetch=0,
            grid=grid,
            in_specs=[x_spec] + const_specs,
            out_specs=out_spec,
        ),
        compiler_params=pltpu.CompilerParams(
            dimension_semantics=("parallel",),   # megacore split on v7x
            vmem_limit_bytes=32 * 1024 * 1024,   # ample headroom on v5e/v6e/v7x
        ),
        cost_estimate=cost,
    )(xt, *kparams)

    return out_row[:, :batch].T                  # back to [batch, 1]


def init_linear(key, fan_in, fan_out):
    """Deterministic init mimicking torch.nn.Linear default (uniform +-1/sqrt(fan_in)).
    Weight stored as [in, out] (so the reference computes x @ W)."""
    kw, kb = jax.random.split(key)
    bound = 1.0 / jnp.sqrt(jnp.float32(fan_in))
    w = jax.random.uniform(kw, (fan_in, fan_out), jnp.float32, -bound, bound)
    b = jax.random.uniform(kb, (1, fan_out), jnp.float32, -bound, bound)
    return w, b


def init_critic_params(key):
    dims = (NUM_OBS,) + tuple(CRITIC_HIDDEN_DIM)
    params = []
    key, sub = jax.random.split(key)
    params += list(init_linear(sub, dims[0], dims[1]))          # hidden1
    for i in range(1, len(dims) - 1):                            # self.hidden Sequential
        key, sub = jax.random.split(key)
        params += list(init_linear(sub, dims[i], dims[i + 1]))
    key, sub = jax.random.split(key)
    params += list(init_linear(sub, dims[-1], 1))                # value head
    return tuple(params)


def critic_reference(x, params):
    """Pure-JAX reference of the same forward pass (un-fused, un-transposed)."""
    w1, b1 = params[0], params[1]
    h = jnp.maximum(x @ w1 + b1, 0.0)
    n_seq = (len(params) - 4) // 2
    idx = 2
    for _ in range(n_seq):
        w, b = params[idx], params[idx + 1]
        h = h @ w + b
        idx += 2
    h = jnp.maximum(h, 0.0)
    wv, bv = params[-2], params[-1]
    return h @ wv + bv


if __name__ == "__main__":
    key = jax.random.PRNGKey(0)
    key, pkey, xkey, xkey2 = jax.random.split(key, 4)

    params = init_critic_params(pkey)
    kparams = prepare_critic_params(params)   # one-time prep, reused across calls

    # Small batch (single tile after lane padding to 128).
    batch = 8
    x = jax.random.normal(xkey, (batch, NUM_OBS), jnp.float32)
    val = jax.block_until_ready(critic_forward(x, kparams))
    ref = critic_reference(x, params)
    assert val.shape == (batch, 1), val.shape
    assert jnp.allclose(val, ref, atol=1e-5, rtol=1e-5), float(jnp.max(jnp.abs(val - ref)))

    # Larger ragged batch: exercises tail padding (600 -> 640) and a multi-tile grid.
    batch2 = 600
    x2 = jax.random.normal(xkey2, (batch2, NUM_OBS), jnp.float32)
    val2 = jax.block_until_ready(critic_forward(x2, kparams))
    ref2 = critic_reference(x2, params)
    assert val2.shape == (batch2, 1), val2.shape
    assert jnp.allclose(val2, ref2, atol=1e-5, rtol=1e-5), float(jnp.max(jnp.abs(val2 - ref2)))

    print("KERNEL_OK")
</pallas_src>

<mosaic_0001>
module attributes {stable_mosaic.version = 11 : i64} {
  func.func @_critic_kernel(%arg0: i32, %arg1: memref<16x128xf32, #tpu.memory_space<vmem>>, %arg2: memref<64x16xf32, #tpu.memory_space<vmem>>, %arg3: memref<64x1xf32, #tpu.memory_space<vmem>>, %arg4: memref<64x64xf32, #tpu.memory_space<vmem>>, %arg5: memref<64x1xf32, #tpu.memory_space<vmem>>, %arg6: memref<1x64xf32, #tpu.memory_space<vmem>>, %arg7: memref<1x1xf32, #tpu.memory_space<vmem>>, %arg8: memref<1x128xf32, #tpu.memory_space<vmem>>) attributes {dimension_semantics = [#tpu.dimension_semantics<parallel>], iteration_bounds = array<i64: 1>, scalar_prefetch = 0 : i64, scratch_operands = 0 : i64, tpu.core_type = #tpu.core_type<tc>, window_params = [{transform_indices = @transform_0, window_bounds = array<i64: 16, 128>}, {pipeline_mode = #tpu.pipeline_mode<synchronous>, transform_indices = @transform_1, window_bounds = array<i64: 64, 16>}, {pipeline_mode = #tpu.pipeline_mode<synchronous>, transform_indices = @transform_2, window_bounds = array<i64: 64, 1>}, {pipeline_mode = #tpu.pipeline_mode<synchronous>, transform_indices = @transform_3, window_bounds = array<i64: 64, 64>}, {pipeline_mode = #tpu.pipeline_mode<synchronous>, transform_indices = @transform_4, window_bounds = array<i64: 64, 1>}, {pipeline_mode = #tpu.pipeline_mode<synchronous>, transform_indices = @transform_5, window_bounds = array<i64: 1, 64>}, {pipeline_mode = #tpu.pipeline_mode<synchronous>, transform_indices = @transform_6, window_bounds = array<i64: 1, 1>}, {transform_indices = @transform_7, window_bounds = array<i64: 1, 128>}]} {
    %c0 = arith.constant 0 : index
    %c0_0 = arith.constant 0 : index
    %0 = vector.load %arg2[%c0, %c0_0] : memref<64x16xf32, #tpu.memory_space<vmem>>, vector<64x16xf32>
    %c0_1 = arith.constant 0 : index
    %c0_2 = arith.constant 0 : index
    %1 = vector.load %arg1[%c0_1, %c0_2] : memref<16x128xf32, #tpu.memory_space<vmem>>, vector<16x128xf32>
    %cst = arith.constant dense<0.000000e+00> : vector<64x128xf32>
    %2 = tpu.matmul %0, %1, %cst {dimension_numbers = #tpu.dot_dimension_numbers<[1], [0], [0], [1], [0, 0, 1, 1], [], []>} : vector<64x16xf32>, vector<16x128xf32>, vector<64x128xf32> -> vector<64x128xf32>
    %c0_3 = arith.constant 0 : index
    %c0_4 = arith.constant 0 : index
    %3 = vector.load %arg3[%c0_3, %c0_4] : memref<64x1xf32, #tpu.memory_space<vmem>>, vector<64x1xf32>
    %4 = vector.broadcast %3 : vector<64x1xf32> to vector<64x128xf32>
    %5 = arith.addf %2, %4 : vector<64x128xf32>
    %cst_5 = arith.constant 0.000000e+00 : f32
    %6 = vector.broadcast %cst_5 : f32 to vector<64x128xf32>
    %7 = arith.maximumf %5, %6 : vector<64x128xf32>
    %c0_6 = arith.constant 0 : index
    %c0_7 = arith.constant 0 : index
    %8 = vector.load %arg4[%c0_6, %c0_7] : memref<64x64xf32, #tpu.memory_space<vmem>>, vector<64x64xf32>
    %cst_8 = arith.constant dense<0.000000e+00> : vector<64x128xf32>
    %9 = tpu.matmul %8, %7, %cst_8 {dimension_numbers = #tpu.dot_dimension_numbers<[1], [0], [0], [1], [0, 0, 1, 1], [], []>} : vector<64x64xf32>, vector<64x128xf32>, vector<64x128xf32> -> vector<64x128xf32>
    %c0_9 = arith.constant 0 : index
    %c0_10 = arith.constant 0 : index
    %10 = vector.load %arg5[%c0_9, %c0_10] : memref<64x1xf32, #tpu.memory_space<vmem>>, vector<64x1xf32>
    %11 = vector.broadcast %10 : vector<64x1xf32> to vector<64x128xf32>
    %12 = arith.addf %9, %11 : vector<64x128xf32>
    %cst_11 = arith.constant 0.000000e+00 : f32
    %13 = vector.broadcast %cst_11 : f32 to vector<64x128xf32>
    %14 = arith.maximumf %12, %13 : vector<64x128xf32>
    %c0_12 = arith.constant 0 : index
    %c0_13 = arith.constant 0 : index
    %15 = vector.load %arg6[%c0_12, %c0_13] : memref<1x64xf32, #tpu.memory_space<vmem>>, vector<1x64xf32>
    %cst_14 = arith.constant dense<0.000000e+00> : vector<1x128xf32>
    %16 = tpu.matmul %15, %14, %cst_14 {dimension_numbers = #tpu.dot_dimension_numbers<[1], [0], [0], [1], [0, 0, 1, 1], [], []>} : vector<1x64xf32>, vector<64x128xf32>, vector<1x128xf32> -> vector<1x128xf32>
    %c0_15 = arith.constant 0 : index
    %c0_16 = arith.constant 0 : index
    %17 = vector.load %arg7[%c0_15, %c0_16] : memref<1x1xf32, #tpu.memory_space<vmem>>, vector<1x1xf32>
    %18 = vector.broadcast %17 : vector<1x1xf32> to vector<1x128xf32>
    %19 = arith.addf %16, %18 : vector<1x128xf32>
    %c0_17 = arith.constant 0 : index
    %c0_18 = arith.constant 0 : index
    %20 = vector.load %arg8[%c0_17, %c0_18] : memref<1x128xf32, #tpu.memory_space<vmem>>, vector<1x128xf32>
    tpu.vector_store %arg8[%c0_17, %c0_18], %19 {strides = array<i32>} : memref<1x128xf32, #tpu.memory_space<vmem>>, vector<1x128xf32>,
    return
  }
  func.func @transform_0(%arg0: i32) -> (i32, i32) {
    %c0_i32 = arith.constant 0 : i32
    %c0_i32_0 = arith.constant 0 : i32
    return %c0_i32, %arg0 : i32, i32
  }
  func.func @transform_1(%arg0: i32) -> (i32, i32) {
    %c0_i32 = arith.constant 0 : i32
    %c0_i32_0 = arith.constant 0 : i32
    %c0_i32_1 = arith.constant 0 : i32
    return %c0_i32, %c0_i32_0 : i32, i32
  }
  func.func @transform_2(%arg0: i32) -> (i32, i32) {
    %c0_i32 = arith.constant 0 : i32
    %c0_i32_0 = arith.constant 0 : i32
    %c0_i32_1 = arith.constant 0 : i32
    return %c0_i32, %c0_i32_0 : i32, i32
  }
  func.func @transform_3(%arg0: i32) -> (i32, i32) {
    %c0_i32 = arith.constant 0 : i32
    %c0_i32_0 = arith.constant 0 : i32
    %c0_i32_1 = arith.constant 0 : i32
    return %c0_i32, %c0_i32_0 : i32, i32
  }
  func.func @transform_4(%arg0: i32) -> (i32, i32) {
    %c0_i32 = arith.constant 0 : i32
    %c0_i32_0 = arith.constant 0 : i32
    %c0_i32_1 = arith.constant 0 : i32
    return %c0_i32, %c0_i32_0 : i32, i32
  }
  func.func @transform_5(%arg0: i32) -> (i32, i32) {
    %c0_i32 = arith.constant 0 : i32
    %c0_i32_0 = arith.constant 0 : i32
    %c0_i32_1 = arith.constant 0 : i32
    return %c0_i32, %c0_i32_0 : i32, i32
  }
  func.func @transform_6(%arg0: i32) -> (i32, i32) {
    %c0_i32 = arith.constant 0 : i32
    %c0_i32_0 = arith.constant 0 : i32
    %c0_i32_1 = arith.constant 0 : i32
    return %c0_i32, %c0_i32_0 : i32, i32
  }
  func.func @transform_7(%arg0: i32) -> (i32, i32) {
    %c0_i32 = arith.constant 0 : i32
    %c0_i32_0 = arith.constant 0 : i32
    return %c0_i32, %arg0 : i32, i32
  }
}

</mosaic_0001>

<bundles_post_ra>
// kernel: critic_forward.1
= control target key start
LH: loop header
LB: loop body
LE: loop exit
PB: predicated region body
PF: predicated region fallthrough
CT: control target
= control target key end

     0   :  { %vm86_vm0 = vcmask 130048   ;;  %v627_v3 = vmov 0   ;;  %vm280_vm1 = vcmask 523264   ;;  %vm629_vm2 = vmmov 0   ;;  %s798_s0 = inlined_call_operand.vmem [shape: f32[16,128], index: 0, kind: input, shape index: {}]   ;;  %s799_s1 = inlined_call_operand.vmem [shape: f32[64,16], index: 1, kind: input, shape index: {}]   ;;  %s800_s6 = inlined_call_operand.<no memory space> [shape: f32[1,1], index: 6, kind: input, shape index: {}]   ;;  %s801_s2 = inlined_call_operand.vmem [shape: f32[64,1], index: 2, kind: input, shape index: {}]   ;;  %s802_s4 = inlined_call_operand.vmem [shape: f32[64,1], index: 4, kind: input, shape index: {}]   ;;  %s803_s3 = inlined_call_operand.vmem [shape: f32[64,64], index: 3, kind: input, shape index: {}]   ;;  %s804_s5 = inlined_call_operand.vmem [shape: f32[1,64], index: 5, kind: input, shape index: {}]   ;;  %s805_s7 = inlined_call_operand.vmem [shape: f32[1,128], index: 7, kind: output, shape index: {}]  }
   0x1   :  { %v37_v0 = vld [vmem:[%s798_s0 + $0x8] sm:$0xff]  ;;  %v36_v1 = vld [vmem:[%s798_s0] sm:$0xff]  ;;  %625 = vset.pattern.permute.xlu0 %v627_v3  ;;  %626 = vset.pattern.permute.xlu1 %v627_v3  ;;  %v12_v4 = vstv %s800_s6  ;;  %v30_v6 = vld [vmem:[%s799_s1 + $0x10] sm:$0xff] }
   0x2   :  { %v28_v2 = vld [vmem:[%s799_s1] sm:$0xff]  ;;  %559 = vmatprep.subr.mxu0 %v37_v0  ;;  %13 = vst [vmem:[#allocation2] sm:$0x1] %v12_v4  ;;  %v29_v5 = vld [vmem:[%s799_s1 + $0x8] sm:$0xff]  ;;  %v45_v7 = vld [vmem:[%s801_s2 + $0x38] sm:$0xff] }
   0x3   :  { %563 = vmatprep.mubr.msk.f32.mxu0 %vm86_vm0, %v28_v2  ;;  %560 = vmatpush3.msra.mxu0 %v37_v0  ;;  %v43_v8 = vld [vmem:[%s801_s2 + $0x28] sm:$0xff]  ;;  %v44_v9 = vld [vmem:[%s801_s2 + $0x30] sm:$0xff]  ;;  %v31_v10 = vld [vmem:[%s799_s1 + $0x18] sm:$0xff] }
   0x4   :  { %561 = vmatprep.subr.mxu0 %v36_v1  ;;  %83 = vperm.xlu0 %625, %v45_v7   ;;  %v42_v11 = vld [vmem:[%s801_s2 + $0x20] sm:$0xff]  ;;  %v41_v13 = vld [vmem:[%s801_s2 + $0x18] sm:$0xff]  ;;  %v33_v14 = vld [vmem:[%s799_s1 + $0x28] sm:$0xff] }
   0x5   :  { %562 = vmatpush3.msra.mxu0 %v36_v1  ;;  %73 = vperm.xlu1 %626, %v43_v8   ;;  %v32_v12 = vld [vmem:[%s799_s1 + $0x20] sm:$0xff]  ;;  %v40_v15 = vld [vmem:[%s801_s2 + $0x10] sm:$0xff]  ;;  %v39_v17 = vld [vmem:[%s801_s2 + $0x8] sm:$0xff] }
   0x6   :  { %564 = vmatmul.mubr.msk.f32.vlgmr.msra.gmra.mxu0 %vm86_vm0, %v29_v5  ;;  %v34_v16 = vld [vmem:[%s799_s1 + $0x30] sm:$0xff]  ;;  %v35_v18 = vld [vmem:[%s799_s1 + $0x38] sm:$0xff]  ;;  %v38_v19 = vld [vmem:[%s801_s2] sm:$0xff]  ;;  %v628_v5 = vmov 0.0  }
   0x7   :  { %566 = vmatprep.mubr.msk.f32.mxu0 %vm86_vm0, %v30_v6  ;;  %v239_v20 = vld [vmem:[%s802_s4 + $0x38] sm:$0xff]  ;;  %v238_v21 = vld [vmem:[%s802_s4 + $0x30] sm:$0xff]  ;;  %v237_v22 = vld [vmem:[%s802_s4 + $0x28] sm:$0xff]  ;;  %603 = vmatprep.subr.mxu0 %v628_v5 }
   0x8   :  { %78 = vperm.xlu0 %625, %v44_v9   ;;  %v236_v23 = vld [vmem:[%s802_s4 + $0x20] sm:$0xff]  ;;  %v235_v24 = vld [vmem:[%s802_s4 + $0x18] sm:$0xff]  ;;  %v234_v25 = vld [vmem:[%s802_s4 + $0x10] sm:$0xff] }
   0x9   :  { %68 = vperm.xlu1 %626, %v42_v11   ;;  %v233_v26 = vld [vmem:[%s802_s4 + $0x8] sm:$0xff]  ;;  %v232_v27 = vld [vmem:[%s802_s4] sm:$0xff]  ;;  %v226_v63 = vld [vmem:[%s803_s3 + $0x10] sm:$0xff] }
   0xa   :  { %567 = vmatmul.mubr.msk.f32.gmra.mxu0 %vm86_vm0, %v31_v10  ;;  %v419_v28 = vld [vmem:[#allocation2] sm:$0x1]  ;;  %v225_v62 = vld [vmem:[%s803_s3 + $0x8] sm:$0xff]  ;;  %v227_v0 = vld [vmem:[%s803_s3 + $0x18] sm:$0xff] }
   0xb   :  { %569 = vmatprep.mubr.msk.f32.mxu0 %vm86_vm0, %v32_v12  ;;  %v224_v29 = vld [vmem:[%s803_s3] sm:$0xff]  ;;  %v229_v2 = vld [vmem:[%s803_s3 + $0x28] sm:$0xff]  ;;  %v230_v3 = vld [vmem:[%s803_s3 + $0x30] sm:$0xff] }
   0xc   :  { %63 = vperm.xlu0 %625, %v41_v13   ;;  %591 = vmatprep.mubr.msk.f32.mxu1 %vm280_vm1, %v224_v29  ;;  %v228_v1 = vld [vmem:[%s803_s3 + $0x20] sm:$0xff]  ;;  %v231_v4 = vld [vmem:[%s803_s3 + $0x38] sm:$0xff] }
   0xd   :  { %58 = vperm.xlu1 %626, %v40_v15  }
   0xe   :  { %570 = vmatmul.mubr.msk.f32.gmra.mxu0 %vm86_vm0, %v33_v14 }
   0xf   :  { %572 = vmatprep.mubr.msk.f32.mxu0 %vm86_vm0, %v34_v16 }
  0x10   :  { %53 = vperm.xlu0 %625, %v39_v17  }
  0x11   :  { %48 = vperm.xlu1 %626, %v38_v19  }
  0x12   :  { %573 = vmatmul.mubr.msk.f32.gmra.mxu0 %vm86_vm0, %v35_v18 }
  0x13   :  { %619 = vmatprep.mubr.msk.f32.mxu0 %vm629_vm2, %v628_v5 }
  0x14   :  { %277 = vperm.xlu0 %625, %v239_v20  }
  0x15   :  { %272 = vperm.xlu1 %626, %v238_v21  }
  0x18   :  { %267 = vperm.xlu0 %625, %v237_v22  }
  0x19   :  { %262 = vperm.xlu1 %626, %v236_v23  }
  0x1c   :  { %257 = vperm.xlu0 %625, %v235_v24  }
  0x1d   :  { %252 = vperm.xlu1 %626, %v234_v25  }
  0x20   :  { %247 = vperm.xlu0 %625, %v233_v26  }
  0x21   :  { %242 = vperm.xlu1 %626, %v232_v27  }
  0x24   :  { %422 = vperm.xlu0 %625, %v419_v28  }
  0x7f   :  { %v84_v32 = vpop.permute.xlu0 %83 }
  0x80   :  { %v74_v34 = vpop.permute.xlu1 %73 }
  0x83   :  { %v79_v37 = vpop.permute.xlu0 %78 }
  0x84   :  { %v69_v39 = vpop.permute.xlu1 %68 }
  0x87   :  { %v64_v46 = vpop.permute.xlu0 %63 }
  0x88   :  { %v59_v49 = vpop.permute.xlu1 %58 }
  0x8b   :  { %v54_v54 = vpop.permute.xlu0 %53 }
  0x8c   :  { %v49_v57 = vpop.permute.xlu1 %48 }
  0x8f   :  { %v278_v8 = vpop.permute.xlu0 %277 }
  0x90   :  { %v273_v10 = vpop.permute.xlu1 %272 }
  0x93   :  { %v268_v13 = vpop.permute.xlu0 %267 }
  0x94   :  { %v263_v15 = vpop.permute.xlu1 %262 }
  0x97   :  { %v258_v22 = vpop.permute.xlu0 %257 }
  0x98   :  { %v253_v25 = vpop.permute.xlu1 %252 }
  0xc6   :  { %v565_v30 = vpop.f32.mrf.mxu0 }
  0xc7   :  { %v183_v55 = vadd.f32 %v565_v30, %v54_v54  ;;  %v248_v30 = vpop.permute.xlu0 %247 }
  0xc8   :  { %v177_v31 = vpop.f32.mrf.mxu0 }
  0xc9   :  { %v178_v58 = vadd.f32 %v177_v31, %v49_v57  ;;  %v217_v60 = vmax.f32 %v183_v55, 0.0 }
  0xca   :  { %v568_v33 = vpop.f32.mrf.mxu0 }
  0xcb   :  { %v193_v50 = vadd.f32 %v568_v33, %v64_v46  ;;  %v216_v61 = vmax.f32 %v178_v58, 0.0  ;;  %v243_v33 = vpop.permute.xlu1 %242 }
  0xcc   :  { %v187_v35 = vpop.f32.mrf.mxu0 }
  0xcd   :  { %v188_v52 = vadd.f32 %v187_v35, %v59_v49  ;;  %v219_v56 = vmax.f32 %v193_v50, 0.0 }
  0xce   :  { %v571_v36 = vpop.f32.mrf.mxu0 }
  0xcf   :  { %v203_v43 = vadd.f32 %v571_v36, %v74_v34  ;;  %v218_v59 = vmax.f32 %v188_v52, 0.0 }
  0xd0   :  { %v197_v38 = vpop.f32.mrf.mxu0 }
  0xd1   :  { %v198_v47 = vadd.f32 %v197_v38, %v69_v39  ;;  %v221_v51 = vmax.f32 %v203_v43, 0.0  ;;  %v418_v38 = vld [vmem:[%s804_s5] sm:$0x1]  ;;  %v425_v39 = vlaneseq }
  0xd2   :  { %v574_v40 = vpop.f32.mrf.mxu0 }
  0xd3   :  { %v213_v41 = vadd.f32 %v574_v40, %v84_v32  ;;  %v220_v53 = vmax.f32 %v198_v47, 0.0  ;;  %v426_v40 = vshrl.u32 %v425_v39, 7 }
  0xd4   :  { %v207_v42 = vpop.f32.mrf.mxu0 }
  0xd5   :  { %v223_v44 = vmax.f32 %v213_v41, 0.0  ;;  %v208_v45 = vadd.f32 %v207_v42, %v79_v37  ;;  %v427_v41 = vsub.s32 0, %v426_v40  ;;  %v423_v42 = vpop.permute.xlu0 %422 }
  0xd7   :  { %v222_v48 = vmax.f32 %v208_v45, 0.0  ;;  %575 = vmatprep.subr.mxu1 %v223_v44  ;;  %v428_v43 = vrot.slane %v423_v42, %v427_v41 }
  0xd8   :  { %576 = vmatpush3.msra.mxu1 %v223_v44 }
  0xd9   :  { %577 = vmatprep.subr.mxu1 %v222_v48 }
  0xda   :  { %578 = vmatpush3.msra.mxu1 %v222_v48 }
  0xdb   :  { %579 = vmatprep.subr.mxu1 %v221_v51 }
  0xdc   :  { %580 = vmatpush3.msra.mxu1 %v221_v51 }
  0xdd   :  { %581 = vmatprep.subr.mxu1 %v220_v53 }
  0xde   :  { %582 = vmatpush3.msra.mxu1 %v220_v53 }
  0xdf   :  { %583 = vmatprep.subr.mxu1 %v219_v56 }
  0xe0   :  { %584 = vmatpush3.msra.mxu1 %v219_v56 }
  0xe1   :  { %585 = vmatprep.subr.mxu1 %v218_v59 }
  0xe2   :  { %586 = vmatpush3.msra.mxu1 %v218_v59 }
  0xe3   :  { %587 = vmatprep.subr.mxu1 %v217_v60 }
  0xe4   :  { %588 = vmatpush3.msra.mxu1 %v217_v60 }
  0xe5   :  { %589 = vmatprep.subr.mxu1 %v216_v61 }
  0xe6   :  { %590 = vmatpush3.msra.mxu1 %v216_v61 }
  0xe7   :  { %592 = vmatmul.mubr.msk.f32.vlgmr.msra.gmra.mxu1 %vm280_vm1, %v225_v62 }
  0xe8   :  { %594 = vmatprep.mubr.msk.f32.mxu1 %vm280_vm1, %v226_v63 }
  0xeb   :  { %595 = vmatmul.mubr.msk.f32.gmra.mxu1 %vm280_vm1, %v227_v0 }
  0xec   :  { %597 = vmatprep.mubr.msk.f32.mxu1 %vm280_vm1, %v228_v1 }
  0xef   :  { %598 = vmatmul.mubr.msk.f32.gmra.mxu1 %vm280_vm1, %v229_v2 }
  0xf0   :  { %600 = vmatprep.mubr.msk.f32.mxu1 %vm280_vm1, %v230_v3 }
  0xf3   :  { %601 = vmatmul.mubr.msk.f32.gmra.mxu1 %vm280_vm1, %v231_v4 }
 0x1a7   :  { %v593_v6 = vpop.f32.mrf.mxu1 }
 0x1a8   :  { %v377_v31 = vadd.f32 %v593_v6, %v248_v30 }
 0x1a9   :  { %v371_v7 = vpop.f32.mrf.mxu1 }
 0x1aa   :  { %v372_v34 = vadd.f32 %v371_v7, %v243_v33  ;;  %v411_v36 = vmax.f32 %v377_v31, 0.0 }
 0x1ab   :  { %v596_v9 = vpop.f32.mrf.mxu1 }
 0x1ac   :  { %v387_v26 = vadd.f32 %v596_v9, %v258_v22  ;;  %v410_v37 = vmax.f32 %v372_v34, 0.0 }
 0x1ad   :  { %v381_v11 = vpop.f32.mrf.mxu1 }
 0x1ae   :  { %v382_v28 = vadd.f32 %v381_v11, %v253_v25  ;;  %v413_v32 = vmax.f32 %v387_v26, 0.0 }
 0x1af   :  { %v599_v12 = vpop.f32.mrf.mxu1 }
 0x1b0   :  { %v397_v19 = vadd.f32 %v599_v12, %v268_v13  ;;  %v412_v35 = vmax.f32 %v382_v28, 0.0 }
 0x1b1   :  { %v391_v14 = vpop.f32.mrf.mxu1 }
 0x1b2   :  { %v392_v23 = vadd.f32 %v391_v14, %v263_v15  ;;  %v415_v27 = vmax.f32 %v397_v19, 0.0 }
 0x1b3   :  { %v602_v16 = vpop.f32.mrf.mxu1 }
 0x1b4   :  { %v407_v17 = vadd.f32 %v602_v16, %v278_v8  ;;  %v414_v29 = vmax.f32 %v392_v23, 0.0 }
 0x1b5   :  { %v401_v18 = vpop.f32.mrf.mxu1 }
 0x1b6   :  { %v417_v20 = vmax.f32 %v407_v17, 0.0  ;;  %v402_v21 = vadd.f32 %v401_v18, %v273_v10 }
 0x1b8   :  { %v416_v24 = vmax.f32 %v402_v21, 0.0  ;;  %604 = vmatpush3.msra.mxu0 %v417_v20 }
 0x1b9   :  { %605 = vmatprep.subr.mxu0 %v628_v5 }
 0x1ba   :  { %606 = vmatpush3.msra.mxu0 %v416_v24 }
 0x1bb   :  { %607 = vmatprep.subr.mxu0 %v628_v5 }
 0x1bc   :  { %608 = vmatpush3.msra.mxu0 %v415_v27 }
 0x1bd   :  { %609 = vmatprep.subr.mxu0 %v628_v5 }
 0x1be   :  { %610 = vmatpush3.msra.mxu0 %v414_v29 }
 0x1bf   :  { %611 = vmatprep.subr.mxu0 %v628_v5 }
 0x1c0   :  { %612 = vmatpush3.msra.mxu0 %v413_v32 }
 0x1c1   :  { %613 = vmatprep.subr.mxu0 %v628_v5 }
 0x1c2   :  { %614 = vmatpush3.msra.mxu0 %v412_v35 }
 0x1c3   :  { %615 = vmatprep.subr.mxu0 %v628_v5 }
 0x1c4   :  { %616 = vmatpush3.msra.mxu0 %v411_v36 }
 0x1c5   :  { %617 = vmatprep.subr.mxu0 %v628_v5 }
 0x1c6   :  { %618 = vmatpush3.msra.mxu0 %v410_v37 }
 0x1c7   :  { %620 = vmatmul.mubr.msk.f32.vlgmr.msra.gmra.mxu0 %vm280_vm1, %v418_v38 }
 0x287   :  { %v498_v44 = vpop.f32.mrf.mxu0 }
 0x288   :  { %v499_v45 = vadd.f32 %v498_v44, %v428_v43 }
 0x289   :  { %v621_v46 = vpop.f32.mrf.mxu0 }
 0x28a   :  { %502 = vst [vmem:[%s805_s7] sm:$0x1] %v499_v45 }

</bundles_post_ra>
